<compile_context>
chip_gen: v6e
topology: v6e:2x2x1
jax: 0.10.0
libtpu: 0.0.40
codegen_flags: <defaults>
</compile_context>

<pallas_src>
from typing import NamedTuple

import jax
import jax.numpy as jnp
from jax.experimental import pallas as pl
from jax.experimental.pallas import tpu as pltpu


def _round_up(x, m):
    return (x + m - 1) // m * m


# ---------------------------------------------------------------------------
# Kernels
# ---------------------------------------------------------------------------
def _ffn_kernel_f32out(x_ref, w1t_ref, b1_ref, w2t_ref, b2_ref, o_ref):
    """f32 output: accumulate directly into o_ref (resident across k)."""
    k = pl.program_id(1)

    @pl.when(k == 0)
    def _():
        o_ref[...] = jnp.zeros_like(o_ref)

    h = jnp.dot(x_ref[...], w1t_ref[...], preferred_element_type=jnp.float32)
    h = jnp.maximum(h + b1_ref[...], 0.0)
    o_ref[...] += jnp.dot(h.astype(w2t_ref.dtype), w2t_ref[...],
                          preferred_element_type=jnp.float32)

    @pl.when(k == pl.num_programs(1) - 1)
    def _():
        o_ref[...] += b2_ref[...]


def _ffn_kernel_acc(x_ref, w1t_ref, b1_ref, w2t_ref, b2_ref, o_ref, acc_ref):
    """Generic output dtype: separate resident f32 accumulator."""
    k = pl.program_id(1)

    @pl.when(k == 0)
    def _():
        acc_ref[...] = jnp.zeros_like(acc_ref)

    h = jnp.dot(x_ref[...], w1t_ref[...], preferred_element_type=jnp.float32)
    h = jnp.maximum(h + b1_ref[...], 0.0)
    acc_ref[...] += jnp.dot(h.astype(w2t_ref.dtype), w2t_ref[...],
                            preferred_element_type=jnp.float32)

    @pl.when(k == pl.num_programs(1) - 1)
    def _():
        o_ref[...] = (acc_ref[...] + b2_ref[...]).astype(o_ref.dtype)


# ---------------------------------------------------------------------------
# Parameter preparation (hoisted out of the hot path: run once per param set)
# ---------------------------------------------------------------------------
class FFNParams(NamedTuple):
    w1t: jax.Array   # (d_model_p, d_ff_p)  compute dtype
    b1r: jax.Array   # (1, d_ff_p)          f32
    w2t: jax.Array   # (d_ff_p, d_model_p)  compute dtype
    b2r: jax.Array   # (1, d_model_p)       f32
    d_model: int
    d_ff: int


def prepare_ffn_params(w1, b1, w2, b2, compute_dtype=None) -> FFNParams:
    """Transpose / pad / cast nn.Linear params once (cache the result)."""
    d_ff, d_model = w1.shape
    if compute_dtype is None:
        compute_dtype = w1.dtype
    compute_dtype = jnp.dtype(compute_dtype)

    d_model_p = _round_up(d_model, 128)
    d_ff_p = _round_up(d_ff, 128)

    w1t = w1.T.astype(compute_dtype)               # (d_model, d_ff)
    w2t = w2.T.astype(compute_dtype)               # (d_ff, d_model)
    if (d_model_p, d_ff_p) != (d_model, d_ff):
        w1t = jnp.zeros((d_model_p, d_ff_p), compute_dtype).at[:d_model, :d_ff].set(w1t)
        w2t = jnp.zeros((d_ff_p, d_model_p), compute_dtype).at[:d_ff, :d_model].set(w2t)
    b1r = jnp.zeros((1, d_ff_p), jnp.float32).at[:, :d_ff].set(
        b1.astype(jnp.float32)[None, :])
    b2r = jnp.zeros((1, d_model_p), jnp.float32).at[:, :d_model].set(
        b2.astype(jnp.float32)[None, :])
    return FFNParams(w1t, b1r, w2t, b2r, int(d_model), int(d_ff))


# ---------------------------------------------------------------------------
# Generation-aware tile selection
# ---------------------------------------------------------------------------
def _vmem_budgets():
    cap = 64 << 20                      # conservative fallback (v7x-sized)
    try:
        info = pltpu.get_tpu_info()
        cap = int(getattr(info, "vmem_capacity_bytes", cap))
    except Exception:
        pass
    tile_budget = int(cap * 0.70)       # for tiles (double-buffered) + scratch
    vmem_limit = int(cap * 0.85)        # scoped-VMEM ceiling passed to Mosaic
    return tile_budget, vmem_limit


def _pick_tk(d_ff_p, tk_target):
    """Largest multiple of 128 that divides d_ff_p and is <= tk_target."""
    units = d_ff_p // 128
    tgt = max(1, tk_target // 128)
    best = 1
    for d in range(1, units + 1):
        if units % d == 0 and d <= tgt:
            best = d
    return best * 128


# ---------------------------------------------------------------------------
# FFN apply
# ---------------------------------------------------------------------------
def ffn_apply(x, params: FFNParams, *, tm=None, tk=None):
    *lead, d_model = x.shape
    assert d_model == params.d_model, "x last dim must equal d_model"
    out_dtype = x.dtype
    compute_dtype = params.w1t.dtype
    d_model_p, d_ff_p = params.w1t.shape

    M = 1
    for s in lead:
        M *= s

    c_item = jnp.dtype(compute_dtype).itemsize
    o_item = jnp.dtype(out_dtype).itemsize
    f32_out = out_dtype == jnp.float32
    tile_budget, vmem_limit = _vmem_budgets()

    # ---- d_ff chunk: divisor of padded d_ff, bounded so weights fit VMEM ----
    if tk is None:
        tk = 1024 if tile_budget >= (80 << 20) else 512
    tk_eff = _pick_tk(d_ff_p, tk)
    while tk_eff > 128 and 4 * d_model_p * tk_eff * c_item > tile_budget // 2:
        tk_eff = _pick_tk(d_ff_p, tk_eff // 2)

    # ---- row tile: the weight-reuse knob; largest that fits the budget ------
    fixed = 4 * d_model_p * tk_eff * c_item + 2 * (tk_eff + d_model_p) * 4
    per_row = d_model_p * (2 * c_item + 2 * o_item + (0 if f32_out else 4))
    tm_max = max(8, (tile_budget - fixed) // per_row)
    if tm is None:
        tm = 1024
    tm = min(tm, tm_max, _round_up(max(M, 1), 8))
    tm = max(8, (tm // 8) * 8)

    # Split rows evenly across tiles to minimize padded (wasted) rows.
    n_row_tiles = -(-M // tm)
    tm_eff = max(8, _round_up(-(-M // n_row_tiles), 8))
    M_p = n_row_tiles * tm_eff

    # ---- activation layout (skip the padding copy when already aligned) -----
    x2d = x.reshape(M, d_model).astype(compute_dtype)
    needs_pad = (M_p != M) or (d_model_p != d_model)
    if needs_pad:
        x2d = jnp.zeros((M_p, d_model_p), compute_dtype).at[:M, :d_model].set(x2d)

    grid = (n_row_tiles, d_ff_p // tk_eff)

    cost = pl.CostEstimate(
        flops=4 * M_p * d_model_p * d_ff_p,
        transcendentals=0,
        bytes_accessed=(
            M_p * d_model_p * (c_item + o_item)                    # x in, y out
            + n_row_tiles * 2 * d_model_p * d_ff_p * c_item        # W1+W2 per row tile
            + n_row_tiles * (d_ff_p + d_model_p) * 4))             # biases

    in_specs = [
        pl.BlockSpec((tm_eff, d_model_p), lambda i, k: (i, 0)),    # x rows
        pl.BlockSpec((d_model_p, tk_eff), lambda i, k: (0, k)),    # W1^T chunk
        pl.BlockSpec((1, tk_eff), lambda i, k: (0, k)),            # b1 chunk
        pl.BlockSpec((tk_eff, d_model_p), lambda i, k: (k, 0)),    # W2^T chunk
        pl.BlockSpec((1, d_model_p), lambda i, k: (0, 0)),         # b2
    ]
    out_spec = pl.BlockSpec((tm_eff, d_model_p), lambda i, k: (i, 0))

    if f32_out:
        kernel = _ffn_kernel_f32out
        scratch = []
    else:
        kernel = _ffn_kernel_acc
        scratch = [pltpu.VMEM((tm_eff, d_model_p), jnp.float32)]

    out = pl.pallas_call(
        kernel,
        out_shape=jax.ShapeDtypeStruct((M_p, d_model_p), out_dtype),
        grid_spec=pltpu.PrefetchScalarGridSpec(
            num_scalar_prefetch=0,
            grid=grid,
            in_specs=in_specs,
            out_specs=out_spec,
            scratch_shapes=scratch),
        compiler_params=pltpu.CompilerParams(
            dimension_semantics=("parallel", "arbitrary"),
            vmem_limit_bytes=vmem_limit),
        cost_estimate=cost,
    )(x2d, params.w1t, params.b1r, params.w2t, params.b2r)

    if needs_pad:
        out = out[:M, :d_model]
    return out.reshape(*lead, d_model)


def position_wise_feed_forward(x, w1, b1, w2, b2, *, tm=None, tk=None,
                               compute_dtype=None):
    """Convenience wrapper matching the PyTorch module's forward.

    For production use, call prepare_ffn_params() once (prefer
    compute_dtype=jnp.bfloat16 on v6e/v7x) and reuse the result with ffn_apply().
    """
    if compute_dtype is None:
        compute_dtype = x.dtype
    params = prepare_ffn_params(w1, b1, w2, b2, compute_dtype=compute_dtype)
    return ffn_apply(x, params, tm=tm, tk=tk)


if __name__ == "__main__":
    # Small, deterministic problem: batch=2, seq=8, d_model=32, d_ff=64
    batch, seq, d_model, d_ff = 2, 8, 32, 64
    key = jax.random.PRNGKey(0)
    kx, kw1, kb1, kw2, kb2 = jax.random.split(key, 5)

    x = jax.random.normal(kx, (batch, seq, d_model), dtype=jnp.float32)
    lim1 = 1.0 / (d_model ** 0.5)
    lim2 = 1.0 / (d_ff ** 0.5)
    w1 = jax.random.uniform(kw1, (d_ff, d_model), minval=-lim1, maxval=lim1)
    b1 = jax.random.uniform(kb1, (d_ff,), minval=-lim1, maxval=lim1)
    w2 = jax.random.uniform(kw2, (d_model, d_ff), minval=-lim2, maxval=lim2)
    b2 = jax.random.uniform(kb2, (d_model,), minval=-lim2, maxval=lim2)

    # Pure-JAX reference of the same forward pass.
    y_ref = jnp.maximum(x @ w1.T + b1, 0.0) @ w2.T + b2

    # f32 path (tight tolerance), one-shot wrapper.
    y = jax.block_until_ready(position_wise_feed_forward(x, w1, b1, w2, b2))
    assert y.shape == (batch, seq, d_model)
    assert jnp.allclose(y, y_ref, atol=1e-5, rtol=1e-5)

    # Production-style path: weights prepared once (bf16 storage / MXU,
    # f32 accumulation), then applied.  Looser tolerance: h is cast to bf16
    # before the second matmul.
    params_bf16 = prepare_ffn_params(w1, b1, w2, b2, compute_dtype=jnp.bfloat16)
    y_bf16 = jax.block_until_ready(ffn_apply(x, params_bf16))
    assert y_bf16.shape == (batch, seq, d_model)
    assert jnp.allclose(y_bf16, y_ref, atol=5e-2, rtol=5e-2)

    # Ragged shapes (M=15 not a tile multiple) exercise the padding path.
    x_odd = jax.random.normal(kx, (3, 5, d_model), dtype=jnp.float32)
    y_odd = jax.block_until_ready(position_wise_feed_forward(x_odd, w1, b1, w2, b2))
    y_odd_ref = jnp.maximum(x_odd @ w1.T + b1, 0.0) @ w2.T + b2
    assert y_odd.shape == (3, 5, d_model)
    assert jnp.allclose(y_odd, y_odd_ref, atol=1e-5, rtol=1e-5)

    print("KERNEL_OK")
</pallas_src>

<mosaic_0001>
module attributes {stable_mosaic.version = 11 : i64} {
  func.func @_ffn_kernel_f32out(%arg0: i32, %arg1: i32, %arg2: memref<16x128xf32, #tpu.memory_space<vmem>>, %arg3: memref<128x128xf32, #tpu.memory_space<vmem>>, %arg4: memref<1x128xf32, #tpu.memory_space<vmem>>, %arg5: memref<128x128xf32, #tpu.memory_space<vmem>>, %arg6: memref<1x128xf32, #tpu.memory_space<vmem>>, %arg7: memref<16x128xf32, #tpu.memory_space<vmem>>) attributes {dimension_semantics = [#tpu.dimension_semantics<parallel>, #tpu.dimension_semantics<arbitrary>], iteration_bounds = array<i64: 1, 1>, scalar_prefetch = 0 : i64, scratch_operands = 0 : i64, tpu.core_type = #tpu.core_type<tc>, window_params = [{transform_indices = @transform_0, window_bounds = array<i64: 16, 128>}, {transform_indices = @transform_1, window_bounds = array<i64: 128, 128>}, {transform_indices = @transform_2, window_bounds = array<i64: 1, 128>}, {transform_indices = @transform_3, window_bounds = array<i64: 128, 128>}, {pipeline_mode = #tpu.pipeline_mode<synchronous>, transform_indices = @transform_4, window_bounds = array<i64: 1, 128>}, {transform_indices = @transform_5, window_bounds = array<i64: 16, 128>}]} {
    %c0_i32 = arith.constant 0 : i32
    %0 = arith.cmpi eq, %arg1, %c0_i32 : i32
    %1 = arith.extui %0 : i1 to i32
    %c0_i32_0 = arith.constant 0 : i32
    %2 = arith.cmpi ne, %1, %c0_i32_0 : i32
    scf.if %2 {
      %cst_16 = arith.constant 0.000000e+00 : f32
      %19 = vector.broadcast %cst_16 : f32 to vector<16x128xf32>
      %c0_17 = arith.constant 0 : index
      %c0_18 = arith.constant 0 : index
      %20 = vector.load %arg7[%c0_17, %c0_18] : memref<16x128xf32, #tpu.memory_space<vmem>>, vector<16x128xf32>
      tpu.vector_store %arg7[%c0_17, %c0_18], %19 {strides = array<i32>} : memref<16x128xf32, #tpu.memory_space<vmem>>, vector<16x128xf32>,
    } else {
    }
    %c0 = arith.constant 0 : index
    %c0_1 = arith.constant 0 : index
    %3 = vector.load %arg2[%c0, %c0_1] : memref<16x128xf32, #tpu.memory_space<vmem>>, vector<16x128xf32>
    %c0_2 = arith.constant 0 : index
    %c0_3 = arith.constant 0 : index
    %4 = vector.load %arg3[%c0_2, %c0_3] : memref<128x128xf32, #tpu.memory_space<vmem>>, vector<128x128xf32>
    %cst = arith.constant dense<0.000000e+00> : vector<16x128xf32>
    %5 = tpu.matmul %3, %4, %cst {dimension_numbers = #tpu.dot_dimension_numbers<[1], [0], [0], [1], [0, 0, 1, 1], [], []>} : vector<16x128xf32>, vector<128x128xf32>, vector<16x128xf32> -> vector<16x128xf32>
    %c0_4 = arith.constant 0 : index
    %c0_5 = arith.constant 0 : index
    %6 = vector.load %arg4[%c0_4, %c0_5] : memref<1x128xf32, #tpu.memory_space<vmem>>, vector<1x128xf32>
    %7 = vector.broadcast %6 : vector<1x128xf32> to vector<16x128xf32>
    %8 = arith.addf %5, %7 : vector<16x128xf32>
    %cst_6 = arith.constant 0.000000e+00 : f32
    %9 = vector.broadcast %cst_6 : f32 to vector<16x128xf32>
    %10 = arith.maximumf %8, %9 : vector<16x128xf32>
    %c0_7 = arith.constant 0 : index
    %c0_8 = arith.constant 0 : index
    %11 = vector.load %arg7[%c0_7, %c0_8] : memref<16x128xf32, #tpu.memory_space<vmem>>, vector<16x128xf32>
    %c0_9 = arith.constant 0 : index
    %c0_10 = arith.constant 0 : index
    %12 = vector.load %arg5[%c0_9, %c0_10] : memref<128x128xf32, #tpu.memory_space<vmem>>, vector<128x128xf32>
    %cst_11 = arith.constant dense<0.000000e+00> : vector<16x128xf32>
    %13 = tpu.matmul %10, %12, %cst_11 {dimension_numbers = #tpu.dot_dimension_numbers<[1], [0], [0], [1], [0, 0, 1, 1], [], []>} : vector<16x128xf32>, vector<128x128xf32>, vector<16x128xf32> -> vector<16x128xf32>
    %14 = arith.addf %11, %13 : vector<16x128xf32>
    %c0_12 = arith.constant 0 : index
    %c0_13 = arith.constant 0 : index
    %15 = vector.load %arg7[%c0_12, %c0_13] : memref<16x128xf32, #tpu.memory_space<vmem>>, vector<16x128xf32>
    tpu.vector_store %arg7[%c0_12, %c0_13], %14 {strides = array<i32>} : memref<16x128xf32, #tpu.memory_space<vmem>>, vector<16x128xf32>,
    %c0_i32_14 = arith.constant 0 : i32
    %16 = arith.cmpi eq, %arg1, %c0_i32_14 : i32
    %17 = arith.extui %16 : i1 to i32
    %c0_i32_15 = arith.constant 0 : i32
    %18 = arith.cmpi ne, %17, %c0_i32_15 : i32
    scf.if %18 {
      %c0_16 = arith.constant 0 : index
      %c0_17 = arith.constant 0 : index
      %19 = vector.load %arg7[%c0_16, %c0_17] : memref<16x128xf32, #tpu.memory_space<vmem>>, vector<16x128xf32>
      %c0_18 = arith.constant 0 : index
      %c0_19 = arith.constant 0 : index
      %20 = vector.load %arg6[%c0_18, %c0_19] : memref<1x128xf32, #tpu.memory_space<vmem>>, vector<1x128xf32>
      %21 = vector.broadcast %20 : vector<1x128xf32> to vector<16x128xf32>
      %22 = arith.addf %19, %21 : vector<16x128xf32>
      %c0_20 = arith.constant 0 : index
      %c0_21 = arith.constant 0 : index
      %23 = vector.load %arg7[%c0_20, %c0_21] : memref<16x128xf32, #tpu.memory_space<vmem>>, vector<16x128xf32>
      tpu.vector_store %arg7[%c0_20, %c0_21], %22 {strides = array<i32>} : memref<16x128xf32, #tpu.memory_space<vmem>>, vector<16x128xf32>,
    } else {
    }
    return
  }
  func.func @transform_0(%arg0: i32, %arg1: i32) -> (i32, i32) {
    %c0_i32 = arith.constant 0 : i32
    %c0_i32_0 = arith.constant 0 : i32
    return %arg0, %c0_i32 : i32, i32
  }
  func.func @transform_1(%arg0: i32, %arg1: i32) -> (i32, i32) {
    %c0_i32 = arith.constant 0 : i32
    %c0_i32_0 = arith.constant 0 : i32
    return %c0_i32, %arg1 : i32, i32
  }
  func.func @transform_2(%arg0: i32, %arg1: i32) -> (i32, i32) {
    %c0_i32 = arith.constant 0 : i32
    %c0_i32_0 = arith.constant 0 : i32
    return %c0_i32, %arg1 : i32, i32
  }
  func.func @transform_3(%arg0: i32, %arg1: i32) -> (i32, i32) {
    %c0_i32 = arith.constant 0 : i32
    %c0_i32_0 = arith.constant 0 : i32
    return %arg1, %c0_i32 : i32, i32
  }
  func.func @transform_4(%arg0: i32, %arg1: i32) -> (i32, i32) {
    %c0_i32 = arith.constant 0 : i32
    %c0_i32_0 = arith.constant 0 : i32
    %c0_i32_1 = arith.constant 0 : i32
    return %c0_i32, %c0_i32_0 : i32, i32
  }
  func.func @transform_5(%arg0: i32, %arg1: i32) -> (i32, i32) {
    %c0_i32 = arith.constant 0 : i32
    %c0_i32_0 = arith.constant 0 : i32
    return %arg0, %c0_i32 : i32, i32
  }
}

</mosaic_0001>

<bundles_post_ra>
// kernel: tpu_custom_call.1
= control target key start
LH: loop header
LB: loop body
LE: loop exit
PB: predicated region body
PF: predicated region fallthrough
CT: control target
= control target key end

     0   :  { %10 = vsyncpa [#allocation3], 0  ;;  %s568_s0 = inlined_call_operand.hbm [shape: f32[16,128], index: 0, kind: input, shape index: {}]   ;;  %s569_s1 = inlined_call_operand.hbm [shape: f32[128,128], index: 1, kind: input, shape index: {}]   ;;  %s570_s2 = inlined_call_operand.vmem [shape: f32[1,128], index: 2, kind: input, shape index: {}]   ;;  %s571_s3 = inlined_call_operand.hbm [shape: f32[128,128], index: 3, kind: input, shape index: {}]   ;;  %s572_s4 = inlined_call_operand.vmem [shape: f32[1,128], index: 4, kind: input, shape index: {}]   ;;  %s573_s5 = inlined_call_operand.hbm [shape: f32[16,128], index: 5, kind: output, shape index: {}]  }
   0x1   :  { %11 = vsyncpa [#allocation6], 0 }
   0x2   :  { %12 = vsyncpa [#allocation4], 0  ;;  %s502_s18 = smov [#allocation5]   ;;  %s503_s20 = smov [#allocation2]  }
   0x3   :  { %s30_s19 = sshll.u32 %s502_s18, 4  ;;  %s18_s21 = sshll.u32 %s503_s20, 4  ;;  %s31_s19 = int_to_ptr.vmem [resolvable:$true] %s30_s19  ;;  %s19_s21 = int_to_ptr.vmem [resolvable:$true] %s18_s21 }
   0x4   :  { %s424_s22 = scalar_lea.vmem %s31_s19, 2048  ;;  %p429_p1 = scmp.lt.s32.totalorder %s31_s19, %s31_s19 }
   0x5   :  { %p425_p0 = scmp.ne.s32.totalorder %s31_s19, %s424_s22  ;;  %p430_p2 = scmp.lt.s32.totalorder %s424_s22, %s424_s22 }
   0x7   :  { %p431_p3 = por %p430_p2, %p429_p1 }
   0x9   :  { %p432_p4 = pnand %p431_p3, %p425_p0 }
   0xb   :  { %435 = shalt.err (!%p432_p4)
}
   0xc   :  { %s504_s23 = smov 128   ;;  %s505_s24 = smov 8  }
   0xd   :  { %36 = dma.hbm_to_vmem [thread:$0]  %s569_s1, 2048, %s31_s19, [#allocation6], %s504_s23, %s504_s23, %s505_s24  }
   0xe   :  { %s444_s27 = scalar_lea.vmem %s19_s21, 256  ;;  %p449_p6 = scmp.lt.s32.totalorder %s19_s21, %s19_s21 }
   0xf   :  { %p445_p5 = scmp.ne.s32.totalorder %s19_s21, %s444_s27  ;;  %p450_p7 = scmp.lt.s32.totalorder %s444_s27, %s444_s27 }
  0x11   :  { %p451_p8 = por %p450_p7, %p449_p6 }
  0x13   :  { %p452_p9 = pnand %p451_p8, %p445_p5 }
  0x15   :  { %455 = shalt.err (!%p452_p9)
}
  0x16   :  { %24 = dma.hbm_to_vmem [thread:$0]  %s568_s0, 256, %s19_s21, [#allocation3], %s504_s23, %s504_s23, %s505_s24  }
  0x17   :  { %s506_s30 = smov [#allocation7]  }
  0x18   :  { %s44_s6 = sshll.u32 %s506_s30, 4  ;;  %s45_s6 = int_to_ptr.vmem [resolvable:$true] %s44_s6 }
  0x19   :  { %s464_s7 = scalar_lea.vmem %s45_s6, 2048  ;;  %p469_p11 = scmp.lt.s32.totalorder %s45_s6, %s45_s6 }
  0x1a   :  { %p465_p10 = scmp.ne.s32.totalorder %s45_s6, %s464_s7  ;;  %p470_p12 = scmp.lt.s32.totalorder %s464_s7, %s464_s7 }
  0x1c   :  { %p471_p13 = por %p470_p12, %p469_p11 }
  0x1e   :  { %p472_p0 = pnand %p471_p13, %p465_p10 }
  0x20   :  { %475 = shalt.err (!%p472_p0)
}
  0x21   :  { %50 = dma.hbm_to_vmem [thread:$0]  %s571_s3, 2048, %s45_s6, [#allocation6], %s504_s23, %s504_s23, %s505_s24  }
  0x22   :  { %496 = dma.done.wait [#allocation3], 256  }
  0x23   :  { %497 = vsyncadd [#allocation3], 4294967040 }
  0x24   :  { %498 = dma.done.wait [#allocation6], 4096  }
  0x25   :  { %499 = vsyncadd [#allocation6], 4294963200  ;;  %v85_v0 = vld [vmem:[#allocation5 + $0x78] sm:$0xff]  ;;  %v84_v1 = vld [vmem:[#allocation5 + $0x70] sm:$0xff]  ;;  %s507_s11 = smov [#allocation8]  }
  0x26   :  { %339 = vmatprep.subr.mxu0 %v85_v0  ;;  %v83_v2 = vld [vmem:[#allocation5 + $0x68] sm:$0xff]  ;;  %v82_v3 = vld [vmem:[#allocation5 + $0x60] sm:$0xff]  ;;  %v68_v4 = vld [vmem:[#allocation2] sm:$0xff]  ;;  %s288_s12 = sshll.u32 %s507_s11, 4  ;;  %s289_s12 = int_to_ptr.vmem [resolvable:$true] %s288_s12 }
  0x27   :  { %340 = vmatpush3.msra.mxu0 %v85_v0  ;;  %v81_v5 = vld [vmem:[#allocation5 + $0x58] sm:$0xff]  ;;  %371 = vmatprep.mubr.f32.mxu0 %v68_v4  ;;  %v186_v7 = vld [vmem:[#allocation7 + $0x70] sm:$0xff]  ;;  %v185_v9 = vld [vmem:[#allocation7 + $0x68] sm:$0xff]  ;;  %p481_p2 = scmp.lt.s32.totalorder %s289_s12, %s289_s12 }
  0x28   :  { %341 = vmatprep.subr.mxu0 %v84_v1  ;;  %v187_v6 = vld [vmem:[#allocation7 + $0x78] sm:$0xff]  ;;  %v80_v8 = vld [vmem:[#allocation5 + $0x50] sm:$0xff]  ;;  %v79_v10 = vld [vmem:[#allocation5 + $0x48] sm:$0xff] }
  0x29   :  { %342 = vmatpush3.msra.mxu0 %v84_v1  ;;  %374 = vmatprep.subr.mxu1 %v187_v6  ;;  %v184_v11 = vld [vmem:[#allocation7 + $0x60] sm:$0xff]  ;;  %v183_v13 = vld [vmem:[#allocation7 + $0x58] sm:$0xff]  ;;  %v182_v15 = vld [vmem:[#allocation7 + $0x50] sm:$0xff] }
  0x2a   :  { %343 = vmatprep.subr.mxu0 %v83_v2  ;;  %375 = vmatpush3.msra.mxu1 %v187_v6  ;;  %v78_v12 = vld [vmem:[#allocation5 + $0x40] sm:$0xff]  ;;  %v77_v14 = vld [vmem:[#allocation5 + $0x38] sm:$0xff]  ;;  %v76_v16 = vld [vmem:[#allocation5 + $0x30] sm:$0xff] }
  0x2b   :  { %344 = vmatpush3.msra.mxu0 %v83_v2  ;;  %376 = vmatprep.subr.mxu1 %v186_v7  ;;  %v181_v17 = vld [vmem:[#allocation7 + $0x48] sm:$0xff]  ;;  %v180_v19 = vld [vmem:[#allocation7 + $0x40] sm:$0xff]  ;;  %v179_v21 = vld [vmem:[#allocation7 + $0x38] sm:$0xff] }
  0x2c   :  { %345 = vmatprep.subr.mxu0 %v82_v3  ;;  %377 = vmatpush3.msra.mxu1 %v186_v7  ;;  %v75_v18 = vld [vmem:[#allocation5 + $0x28] sm:$0xff]  ;;  %v74_v20 = vld [vmem:[#allocation5 + $0x20] sm:$0xff]  ;;  %v73_v22 = vld [vmem:[#allocation5 + $0x18] sm:$0xff] }
  0x2d   :  { %346 = vmatpush3.msra.mxu0 %v82_v3  ;;  %378 = vmatprep.subr.mxu1 %v185_v9  ;;  %v178_v23 = vld [vmem:[#allocation7 + $0x30] sm:$0xff]  ;;  %v177_v25 = vld [vmem:[#allocation7 + $0x28] sm:$0xff]  ;;  %v176_v27 = vld [vmem:[#allocation7 + $0x20] sm:$0xff] }
  0x2e   :  { %347 = vmatprep.subr.mxu0 %v81_v5  ;;  %379 = vmatpush3.msra.mxu1 %v185_v9  ;;  %v72_v24 = vld [vmem:[#allocation5 + $0x10] sm:$0xff]  ;;  %v71_v26 = vld [vmem:[#allocation5 + $0x8] sm:$0xff]  ;;  %v70_v28 = vld [vmem:[#allocation5] sm:$0xff] }
  0x2f   :  { %348 = vmatpush3.msra.mxu0 %v81_v5  ;;  %380 = vmatprep.subr.mxu1 %v184_v11  ;;  %v69_v29 = vld [vmem:[#allocation2 + $0x8] sm:$0xff]  ;;  %v174_v31 = vld [vmem:[#allocation7 + $0x10] sm:$0xff]  ;;  %v173_v32 = vld [vmem:[#allocation7 + $0x8] sm:$0xff] }
  0x30   :  { %349 = vmatprep.subr.mxu0 %v80_v8  ;;  %381 = vmatpush3.msra.mxu1 %v184_v11  ;;  %v175_v30 = vld [vmem:[#allocation7 + $0x18] sm:$0xff]  ;;  %v172_v33 = vld [vmem:[#allocation7] sm:$0xff]  ;;  %v301_v34 = vld [vmem:[%s570_s2] ss:$0 sm:$0xff]  ;;  %s476_s2 = scalar_lea.vmem %s289_s12, 256 }
  0x31   :  { %350 = vmatpush3.msra.mxu0 %v80_v8  ;;  %382 = vmatprep.subr.mxu1 %v183_v13  ;;  %v302_v42 = vld [vmem:[%s572_s4] ss:$0 sm:$0xff]  ;;  %p477_p1 = scmp.ne.s32.totalorder %s289_s12, %s476_s2  ;;  %p482_p3 = scmp.lt.s32.totalorder %s476_s2, %s476_s2 }
  0x32   :  { %351 = vmatprep.subr.mxu0 %v79_v10  ;;  %383 = vmatpush3.msra.mxu1 %v183_v13 }
  0x33   :  { %352 = vmatpush3.msra.mxu0 %v79_v10  ;;  %384 = vmatprep.subr.mxu1 %v182_v15  ;;  %p483_p4 = por %p482_p3, %p481_p2 }
  0x34   :  { %353 = vmatprep.subr.mxu0 %v78_v12  ;;  %385 = vmatpush3.msra.mxu1 %v182_v15 }
  0x35   :  { %354 = vmatpush3.msra.mxu0 %v78_v12  ;;  %386 = vmatprep.subr.mxu1 %v181_v17  ;;  %p484_p5 = pnand %p483_p4, %p477_p1 }
  0x36   :  { %355 = vmatprep.subr.mxu0 %v77_v14  ;;  %387 = vmatpush3.msra.mxu1 %v181_v17 }
  0x37   :  { %356 = vmatpush3.msra.mxu0 %v77_v14  ;;  %388 = vmatprep.subr.mxu1 %v180_v19 }
  0x38   :  { %357 = vmatprep.subr.mxu0 %v76_v16  ;;  %389 = vmatpush3.msra.mxu1 %v180_v19 }
  0x39   :  { %358 = vmatpush3.msra.mxu0 %v76_v16  ;;  %390 = vmatprep.subr.mxu1 %v179_v21 }
  0x3a   :  { %359 = vmatprep.subr.mxu0 %v75_v18  ;;  %391 = vmatpush3.msra.mxu1 %v179_v21 }
  0x3b   :  { %360 = vmatpush3.msra.mxu0 %v75_v18  ;;  %392 = vmatprep.subr.mxu1 %v178_v23 }
  0x3c   :  { %361 = vmatprep.subr.mxu0 %v74_v20  ;;  %393 = vmatpush3.msra.mxu1 %v178_v23 }
  0x3d   :  { %362 = vmatpush3.msra.mxu0 %v74_v20  ;;  %394 = vmatprep.subr.mxu1 %v177_v25 }
  0x3e   :  { %363 = vmatprep.subr.mxu0 %v73_v22  ;;  %395 = vmatpush3.msra.mxu1 %v177_v25 }
  0x3f   :  { %364 = vmatpush3.msra.mxu0 %v73_v22  ;;  %396 = vmatprep.subr.mxu1 %v176_v27 }
  0x40   :  { %365 = vmatprep.subr.mxu0 %v72_v24  ;;  %397 = vmatpush3.msra.mxu1 %v176_v27 }
  0x41   :  { %366 = vmatpush3.msra.mxu0 %v72_v24  ;;  %398 = vmatprep.subr.mxu1 %v175_v30 }
  0x42   :  { %367 = vmatprep.subr.mxu0 %v71_v26  ;;  %399 = vmatpush3.msra.mxu1 %v175_v30 }
  0x43   :  { %368 = vmatpush3.msra.mxu0 %v71_v26  ;;  %400 = vmatprep.subr.mxu1 %v174_v31 }
  0x44   :  { %369 = vmatprep.subr.mxu0 %v70_v28  ;;  %401 = vmatpush3.msra.mxu1 %v174_v31 }
  0x45   :  { %370 = vmatpush3.msra.mxu0 %v70_v28  ;;  %402 = vmatprep.subr.mxu1 %v173_v32 }
  0x46   :  { %372 = vmatmul.mubr.f32.vlgmr.msra.gmra.mxu0 %v69_v29  ;;  %403 = vmatpush3.msra.mxu1 %v173_v32 }
  0x47   :  { %404 = vmatprep.subr.mxu1 %v172_v33 }
  0x48   :  { %405 = vmatpush3.msra.mxu1 %v172_v33 }
 0x106   :  { %v373_v35 = vpop.f32.mrf.mxu0 }
 0x107   :  { %v165_v36 = vadd.f32 %v373_v35, %v301_v34 }
 0x108   :  { %v159_v37 = vpop.f32.mrf.mxu0 }
 0x109   :  { %v160_v38 = vadd.f32 %v301_v34, %v159_v37  ;;  %v169_v40 = vmax.f32 %v165_v36, 0.0 }
 0x10b   :  { %v168_v39 = vmax.f32 %v160_v38, 0.0 }
 0x10d   :  { %406 = vmatprep.mubr.f32.mxu1 %v168_v39 }
 0x10e   :  { %407 = vmatmul.mubr.f32.vlgmr.msra.gmra.mxu1 %v169_v40 }
 0x1ce   :  { %v408_v41 = vpop.f32.mrf.mxu1 }
 0x1cf   :  { %v280_v44 = vadd.f32 %v408_v41, %v302_v42 }
 0x1d0   :  { %v254_v43 = vpop.f32.mrf.mxu1 }
 0x1d1   :  { %v279_v45 = vadd.f32 %v302_v42, %v254_v43  ;;  %282 = vst [vmem:[#allocation8 + $0x8] sm:$0xff] %v280_v44 }
 0x1d3   :  { %281 = vst [vmem:[#allocation8] sm:$0xff] %v279_v45 }
 0x1d4   :  { %487 = shalt.err (!%p484_p5)
}
 0x1d5   :  { %294 = dma.vmem_to_hbm [thread:$0]  %s289_s12, 256, %s573_s5, [#allocation4], %s504_s23, %s504_s23, %s505_s24  }
 0x1d6   :  { %500 = dma.done.wait [#allocation4], 256  }
 0x1d7   :  { %501 = vsyncadd [#allocation4], 4294967040 }
 0x1d8   :  { %298 = vsyncpa [#allocation3], 1 }
 0x1d9   :  { %299 = vsyncpa [#allocation6], 1 }
 0x1da   :  { %300 = vsyncpa [#allocation4], 1 }

</bundles_post_ra>
